<compile_context>
chip_gen: v7x
topology: tpu7x:2x2x1
jax: 0.10.0
libtpu: 0.0.40
codegen_flags: <defaults>
</compile_context>

<pallas_src>
import functools

import jax
import jax.numpy as jnp
from jax.experimental import pallas as pl
from jax.experimental.pallas import tpu as pltpu


def _resnet_block_kernel(x_ref, m_ref, w1_ref, b1_ref, w2_ref, b2_ref,
                         g1_ref, be1_ref, o_ref, *, img_w):
    """One batch element per grid step; everything in (C, H*W) layout."""
    x = x_ref[0]                              # (Cin, HW) f32, lane-dense
    hw = x.shape[-1]

    def im2col(h):
        """(C, HW) -> (9*C, HW): 3x3 taps via static lane shifts + border masks.

        The masks zero out positions whose source pixel falls outside the
        image, which is exactly zero-padding ('SAME' conv)."""
        pieces = []
        tap = 0
        for dy in (-1, 0, 1):
            for dx in (-1, 0, 1):
                off = dy * img_w + dx
                shifted = h if off == 0 else jnp.roll(h, -off, axis=1)
                pieces.append(shifted * m_ref[tap:tap + 1, :])
                tap += 1
        return jnp.concatenate(pieces, axis=0)

    # branch a: affine1 + ReLU -> conv_aa (affine2 folded into weights) -> ReLU
    h1 = jnp.maximum(x * g1_ref[...] + be1_ref[...], 0.0)
    a1 = jnp.dot(w1_ref[...], im2col(h1), preferred_element_type=jnp.float32)
    h2 = jnp.maximum(a1 + b1_ref[...], 0.0)

    # conv_ab fused with the 1x1 shortcut conv_b: one matmul + one bias add
    patch = jnp.concatenate([im2col(h2), x], axis=0)        # (9*Cout+Cin, HW)
    out = jnp.dot(w2_ref[...], patch,
                  preferred_element_type=jnp.float32) + b2_ref[...]
    o_ref[0] = out.astype(o_ref.dtype)


def resnet_block_forward(x_nchw, params):
    """x_nchw: (N, Cin, H, W) float32 (native PyTorch layout)."""
    N, Cin, H, W = x_nchw.shape
    Cout = params['w_aa'].shape[-1]
    HW = H * W

    x_flat = x_nchw.reshape(N, Cin, HW)

    # --- fold affine2 (g2, be2) into conv_aa weights/bias -------------------
    g2 = params['g2'].reshape(Cout)
    be2 = params['be2'].reshape(Cout)
    w_aa = params['w_aa'] * g2.reshape(1, 1, 1, Cout)          # (3,3,Cin,Cout)
    w1 = jnp.transpose(w_aa, (3, 0, 1, 2)).reshape(Cout, 9 * Cin)
    b1 = (params['b_aa'].reshape(Cout) * g2 + be2).reshape(Cout, 1)

    # --- fuse conv_ab with the 1x1 shortcut conv_b --------------------------
    w_ab_flat = jnp.transpose(params['w_ab'], (3, 0, 1, 2)).reshape(Cout, 9 * Cout)
    w_b_t = params['w_b'].T                                    # (Cout, Cin)
    w2 = jnp.concatenate([w_ab_flat, w_b_t], axis=1)           # (Cout, 9*Cout+Cin)
    b2 = (params['b_ab'].reshape(Cout) + params['b_b'].reshape(Cout)).reshape(Cout, 1)

    g1 = params['g1'].reshape(Cin, 1)
    be1 = params['be1'].reshape(Cin, 1)

    # --- border-validity masks for the 9 taps (zero padding) ----------------
    ys = jnp.arange(H).reshape(H, 1)
    xs = jnp.arange(W).reshape(1, W)
    mask_rows = []
    for dy in (-1, 0, 1):
        for dx in (-1, 0, 1):
            valid = ((ys + dy >= 0) & (ys + dy < H) &
                     (xs + dx >= 0) & (xs + dx < W))
            mask_rows.append(valid.reshape(HW).astype(jnp.float32))
    masks = jnp.stack(mask_rows, axis=0)                       # (9, HW)

    kernel = functools.partial(_resnet_block_kernel, img_w=W)

    out_flat = pl.pallas_call(
        kernel,
        out_shape=jax.ShapeDtypeStruct((N, Cout, HW), jnp.float32),
        grid_spec=pltpu.PrefetchScalarGridSpec(
            num_scalar_prefetch=0,
            grid=(N,),
            in_specs=[
                pl.BlockSpec((1, Cin, HW), lambda n: (n, 0, 0)),
                pl.BlockSpec((9, HW), lambda n: (0, 0)),
                pl.BlockSpec((Cout, 9 * Cin), lambda n: (0, 0)),
                pl.BlockSpec((Cout, 1), lambda n: (0, 0)),
                pl.BlockSpec((Cout, 9 * Cout + Cin), lambda n: (0, 0)),
                pl.BlockSpec((Cout, 1), lambda n: (0, 0)),
                pl.BlockSpec((Cin, 1), lambda n: (0, 0)),
                pl.BlockSpec((Cin, 1), lambda n: (0, 0)),
            ],
            out_specs=pl.BlockSpec((1, Cout, HW), lambda n: (n, 0, 0)),
        ),
        compiler_params=pltpu.CompilerParams(
            dimension_semantics=("parallel",)),
    )(x_flat, masks, w1, b1, w2, b2, g1, be1)

    return out_flat.reshape(N, Cout, H, W)


def init_params(key, in_c, in_o):
    ks = jax.random.split(key, 10)

    def u(k, shape, fan_in):
        bound = 1.0 / jnp.sqrt(float(fan_in))
        return jax.random.uniform(k, shape, jnp.float32, -bound, bound)

    return dict(
        w_aa=u(ks[0], (3, 3, in_c, in_o), 9 * in_c),   # conv_aa: 3x3, pad 1
        b_aa=u(ks[1], (1, in_o), 9 * in_c),
        w_ab=u(ks[2], (3, 3, in_o, in_o), 9 * in_o),   # conv_ab: 3x3, pad 1
        b_ab=u(ks[3], (1, in_o), 9 * in_o),
        w_b=u(ks[4], (in_c, in_o), in_c),              # conv_b: 1x1
        b_b=u(ks[5], (1, in_o), in_c),
        g1=1.0 + 0.1 * jax.random.normal(ks[6], (1, in_c), jnp.float32),
        be1=0.1 * jax.random.normal(ks[7], (1, in_c), jnp.float32),
        g2=1.0 + 0.1 * jax.random.normal(ks[8], (1, in_o), jnp.float32),
        be2=0.1 * jax.random.normal(ks[9], (1, in_o), jnp.float32),
    )


def ref_forward(x_nchw, p):
    """Pure-JAX (NCHW) reference for correctness checking."""
    dn = ('NCHW', 'HWIO', 'NCHW')

    def conv(h, w, b, pad):
        out = jax.lax.conv_general_dilated(
            h, w, window_strides=(1, 1), padding=pad, dimension_numbers=dn)
        return out + b.reshape(1, -1, 1, 1)

    g1 = p['g1'].reshape(1, -1, 1, 1)
    be1 = p['be1'].reshape(1, -1, 1, 1)
    g2 = p['g2'].reshape(1, -1, 1, 1)
    be2 = p['be2'].reshape(1, -1, 1, 1)

    h = jnp.maximum(x_nchw * g1 + be1, 0.0)
    h = conv(h, p['w_aa'], p['b_aa'], 'SAME')
    h = jnp.maximum(h * g2 + be2, 0.0)
    h = conv(h, p['w_ab'], p['b_ab'], 'SAME')
    xb = conv(x_nchw, p['w_b'].reshape(1, 1, *p['w_b'].shape), p['b_b'], 'VALID')
    return h + xb


if __name__ == "__main__":
    key = jax.random.PRNGKey(0)
    kx, kp = jax.random.split(key)

    N, C_in, H, W = 2, 4, 16, 16      # PyTorch NCHW input shape
    C_out = 8                          # in_o != in_c -> ch_b is conv_b

    x_nchw = jax.random.normal(kx, (N, C_in, H, W), jnp.float32)
    params = init_params(kp, C_in, C_out)

    out = resnet_block_forward(x_nchw, params)
    out = jax.block_until_ready(out)

    ref = ref_forward(x_nchw, params)
    max_err = float(jnp.max(jnp.abs(out - ref)))
    assert jnp.allclose(out, ref, rtol=1e-4, atol=1e-4), max_err

    print("KERNEL_OK")
</pallas_src>

<mosaic_0001>
module attributes {stable_mosaic.version = 11 : i64} {
  func.func @_resnet_block_kernel(%arg0: i32, %arg1: memref<1x4x256xf32, #tpu.memory_space<vmem>>, %arg2: memref<9x256xf32, #tpu.memory_space<vmem>>, %arg3: memref<8x36xf32, #tpu.memory_space<vmem>>, %arg4: memref<8x1xf32, #tpu.memory_space<vmem>>, %arg5: memref<8x76xf32, #tpu.memory_space<vmem>>, %arg6: memref<8x1xf32, #tpu.memory_space<vmem>>, %arg7: memref<4x1xf32, #tpu.memory_space<vmem>>, %arg8: memref<4x1xf32, #tpu.memory_space<vmem>>, %arg9: memref<1x8x256xf32, #tpu.memory_space<vmem>>) attributes {dimension_semantics = [#tpu.dimension_semantics<parallel>], iteration_bounds = array<i64: 2>, scalar_prefetch = 0 : i64, scratch_operands = 0 : i64, tpu.core_type = #tpu.core_type<tc>, window_params = [{transform_indices = @transform_0, window_bounds = array<i64: 1, 4, 256>}, {pipeline_mode = #tpu.pipeline_mode<synchronous>, transform_indices = @transform_1, window_bounds = array<i64: 9, 256>}, {pipeline_mode = #tpu.pipeline_mode<synchronous>, transform_indices = @transform_2, window_bounds = array<i64: 8, 36>}, {pipeline_mode = #tpu.pipeline_mode<synchronous>, transform_indices = @transform_3, window_bounds = array<i64: 8, 1>}, {pipeline_mode = #tpu.pipeline_mode<synchronous>, transform_indices = @transform_4, window_bounds = array<i64: 8, 76>}, {pipeline_mode = #tpu.pipeline_mode<synchronous>, transform_indices = @transform_5, window_bounds = array<i64: 8, 1>}, {pipeline_mode = #tpu.pipeline_mode<synchronous>, transform_indices = @transform_6, window_bounds = array<i64: 4, 1>}, {pipeline_mode = #tpu.pipeline_mode<synchronous>, transform_indices = @transform_7, window_bounds = array<i64: 4, 1>}, {transform_indices = @transform_8, window_bounds = array<i64: 1, 8, 256>}]} {
    %c0 = arith.constant 0 : index
    %c0_0 = arith.constant 0 : index
    %c0_1 = arith.constant 0 : index
    %0 = vector.load %arg1[%c0, %c0_0, %c0_1] : memref<1x4x256xf32, #tpu.memory_space<vmem>>, vector<1x4x256xf32>
    %1 = vector.shape_cast %0 : vector<1x4x256xf32> to vector<4x256xf32>
    %c0_2 = arith.constant 0 : index
    %c0_3 = arith.constant 0 : index
    %2 = vector.load %arg7[%c0_2, %c0_3] : memref<4x1xf32, #tpu.memory_space<vmem>>, vector<4x1xf32>
    %3 = vector.broadcast %2 : vector<4x1xf32> to vector<4x256xf32>
    %4 = arith.mulf %1, %3 : vector<4x256xf32>
    %c0_4 = arith.constant 0 : index
    %c0_5 = arith.constant 0 : index
    %5 = vector.load %arg8[%c0_4, %c0_5] : memref<4x1xf32, #tpu.memory_space<vmem>>, vector<4x1xf32>
    %6 = vector.broadcast %5 : vector<4x1xf32> to vector<4x256xf32>
    %7 = arith.addf %4, %6 : vector<4x256xf32>
    %cst = arith.constant 0.000000e+00 : f32
    %8 = vector.broadcast %cst : f32 to vector<4x256xf32>
    %9 = arith.maximumf %7, %8 : vector<4x256xf32>
    %c0_6 = arith.constant 0 : index
    %c0_7 = arith.constant 0 : index
    %10 = vector.load %arg3[%c0_6, %c0_7] : memref<8x36xf32, #tpu.memory_space<vmem>>, vector<8x36xf32>
    %11 = vector.extract_strided_slice %9 {offsets = [0, 239], sizes = [4, 17], strides = [1, 1]} : vector<4x256xf32> to vector<4x17xf32>
    %12 = vector.extract_strided_slice %9 {offsets = [0, 0], sizes = [4, 239], strides = [1, 1]} : vector<4x256xf32> to vector<4x239xf32>
    %13 = tpu.concatenate %11, %12 in 1 : vector<4x17xf32>, vector<4x239xf32> -> vector<4x256xf32>
    %c0_8 = arith.constant 0 : index
    %c0_9 = arith.constant 0 : index
    %14 = vector.load %arg2[%c0_8, %c0_9] : memref<9x256xf32, #tpu.memory_space<vmem>>, vector<1x256xf32>
    %15 = vector.broadcast %14 : vector<1x256xf32> to vector<4x256xf32>
    %16 = arith.mulf %13, %15 : vector<4x256xf32>
    %17 = vector.extract_strided_slice %9 {offsets = [0, 240], sizes = [4, 16], strides = [1, 1]} : vector<4x256xf32> to vector<4x16xf32>
    %18 = vector.extract_strided_slice %9 {offsets = [0, 0], sizes = [4, 240], strides = [1, 1]} : vector<4x256xf32> to vector<4x240xf32>
    %19 = tpu.concatenate %17, %18 in 1 : vector<4x16xf32>, vector<4x240xf32> -> vector<4x256xf32>
    %c1 = arith.constant 1 : index
    %c0_10 = arith.constant 0 : index
    %20 = vector.load %arg2[%c1, %c0_10] : memref<9x256xf32, #tpu.memory_space<vmem>>, vector<1x256xf32>
    %21 = vector.broadcast %20 : vector<1x256xf32> to vector<4x256xf32>
    %22 = arith.mulf %19, %21 : vector<4x256xf32>
    %23 = vector.extract_strided_slice %9 {offsets = [0, 241], sizes = [4, 15], strides = [1, 1]} : vector<4x256xf32> to vector<4x15xf32>
    %24 = vector.extract_strided_slice %9 {offsets = [0, 0], sizes = [4, 241], strides = [1, 1]} : vector<4x256xf32> to vector<4x241xf32>
    %25 = tpu.concatenate %23, %24 in 1 : vector<4x15xf32>, vector<4x241xf32> -> vector<4x256xf32>
    %c2 = arith.constant 2 : index
    %c0_11 = arith.constant 0 : index
    %26 = vector.load %arg2[%c2, %c0_11] : memref<9x256xf32, #tpu.memory_space<vmem>>, vector<1x256xf32>
    %27 = vector.broadcast %26 : vector<1x256xf32> to vector<4x256xf32>
    %28 = arith.mulf %25, %27 : vector<4x256xf32>
    %29 = vector.extract_strided_slice %9 {offsets = [0, 255], sizes = [4, 1], strides = [1, 1]} : vector<4x256xf32> to vector<4x1xf32>
    %30 = vector.extract_strided_slice %9 {offsets = [0, 0], sizes = [4, 255], strides = [1, 1]} : vector<4x256xf32> to vector<4x255xf32>
    %31 = tpu.concatenate %29, %30 in 1 : vector<4x1xf32>, vector<4x255xf32> -> vector<4x256xf32>
    %c3 = arith.constant 3 : index
    %c0_12 = arith.constant 0 : index
    %32 = vector.load %arg2[%c3, %c0_12] : memref<9x256xf32, #tpu.memory_space<vmem>>, vector<1x256xf32>
    %33 = vector.broadcast %32 : vector<1x256xf32> to vector<4x256xf32>
    %34 = arith.mulf %31, %33 : vector<4x256xf32>
    %c4 = arith.constant 4 : index
    %c0_13 = arith.constant 0 : index
    %35 = vector.load %arg2[%c4, %c0_13] : memref<9x256xf32, #tpu.memory_space<vmem>>, vector<1x256xf32>
    %36 = vector.broadcast %35 : vector<1x256xf32> to vector<4x256xf32>
    %37 = arith.mulf %9, %36 : vector<4x256xf32>
    %38 = vector.extract_strided_slice %9 {offsets = [0, 1], sizes = [4, 255], strides = [1, 1]} : vector<4x256xf32> to vector<4x255xf32>
    %39 = vector.extract_strided_slice %9 {offsets = [0, 0], sizes = [4, 1], strides = [1, 1]} : vector<4x256xf32> to vector<4x1xf32>
    %40 = tpu.concatenate %38, %39 in 1 : vector<4x255xf32>, vector<4x1xf32> -> vector<4x256xf32>
    %c5 = arith.constant 5 : index
    %c0_14 = arith.constant 0 : index
    %41 = vector.load %arg2[%c5, %c0_14] : memref<9x256xf32, #tpu.memory_space<vmem>>, vector<1x256xf32>
    %42 = vector.broadcast %41 : vector<1x256xf32> to vector<4x256xf32>
    %43 = arith.mulf %40, %42 : vector<4x256xf32>
    %44 = vector.extract_strided_slice %9 {offsets = [0, 15], sizes = [4, 241], strides = [1, 1]} : vector<4x256xf32> to vector<4x241xf32>
    %45 = vector.extract_strided_slice %9 {offsets = [0, 0], sizes = [4, 15], strides = [1, 1]} : vector<4x256xf32> to vector<4x15xf32>
    %46 = tpu.concatenate %44, %45 in 1 : vector<4x241xf32>, vector<4x15xf32> -> vector<4x256xf32>
    %c6 = arith.constant 6 : index
    %c0_15 = arith.constant 0 : index
    %47 = vector.load %arg2[%c6, %c0_15] : memref<9x256xf32, #tpu.memory_space<vmem>>, vector<1x256xf32>
    %48 = vector.broadcast %47 : vector<1x256xf32> to vector<4x256xf32>
    %49 = arith.mulf %46, %48 : vector<4x256xf32>
    %50 = vector.extract_strided_slice %9 {offsets = [0, 16], sizes = [4, 240], strides = [1, 1]} : vector<4x256xf32> to vector<4x240xf32>
    %51 = vector.extract_strided_slice %9 {offsets = [0, 0], sizes = [4, 16], strides = [1, 1]} : vector<4x256xf32> to vector<4x16xf32>
    %52 = tpu.concatenate %50, %51 in 1 : vector<4x240xf32>, vector<4x16xf32> -> vector<4x256xf32>
    %c7 = arith.constant 7 : index
    %c0_16 = arith.constant 0 : index
    %53 = vector.load %arg2[%c7, %c0_16] : memref<9x256xf32, #tpu.memory_space<vmem>>, vector<1x256xf32>
    %54 = vector.broadcast %53 : vector<1x256xf32> to vector<4x256xf32>
    %55 = arith.mulf %52, %54 : vector<4x256xf32>
    %56 = vector.extract_strided_slice %9 {offsets = [0, 17], sizes = [4, 239], strides = [1, 1]} : vector<4x256xf32> to vector<4x239xf32>
    %57 = vector.extract_strided_slice %9 {offsets = [0, 0], sizes = [4, 17], strides = [1, 1]} : vector<4x256xf32> to vector<4x17xf32>
    %58 = tpu.concatenate %56, %57 in 1 : vector<4x239xf32>, vector<4x17xf32> -> vector<4x256xf32>
    %c8 = arith.constant 8 : index
    %c0_17 = arith.constant 0 : index
    %59 = vector.load %arg2[%c8, %c0_17] : memref<9x256xf32, #tpu.memory_space<vmem>>, vector<1x256xf32>
    %60 = vector.broadcast %59 : vector<1x256xf32> to vector<4x256xf32>
    %61 = arith.mulf %58, %60 : vector<4x256xf32>
    %62 = tpu.concatenate %16, %22, %28, %34, %37, %43, %49, %55, %61 in 0 : vector<4x256xf32>, vector<4x256xf32>, vector<4x256xf32>, vector<4x256xf32>, vector<4x256xf32>, vector<4x256xf32>, vector<4x256xf32>, vector<4x256xf32>, vector<4x256xf32> -> vector<36x256xf32>
    %cst_18 = arith.constant dense<0.000000e+00> : vector<8x256xf32>
    %63 = tpu.matmul %10, %62, %cst_18 {dimension_numbers = #tpu.dot_dimension_numbers<[1], [0], [0], [1], [0, 0, 1, 1], [], []>} : vector<8x36xf32>, vector<36x256xf32>, vector<8x256xf32> -> vector<8x256xf32>
    %c0_19 = arith.constant 0 : index
    %c0_20 = arith.constant 0 : index
    %64 = vector.load %arg4[%c0_19, %c0_20] : memref<8x1xf32, #tpu.memory_space<vmem>>, vector<8x1xf32>
    %65 = vector.broadcast %64 : vector<8x1xf32> to vector<8x256xf32>
    %66 = arith.addf %63, %65 : vector<8x256xf32>
    %cst_21 = arith.constant 0.000000e+00 : f32
    %67 = vector.broadcast %cst_21 : f32 to vector<8x256xf32>
    %68 = arith.maximumf %66, %67 : vector<8x256xf32>
    %69 = vector.extract_strided_slice %68 {offsets = [0, 239], sizes = [8, 17], strides = [1, 1]} : vector<8x256xf32> to vector<8x17xf32>
    %70 = vector.extract_strided_slice %68 {offsets = [0, 0], sizes = [8, 239], strides = [1, 1]} : vector<8x256xf32> to vector<8x239xf32>
    %71 = tpu.concatenate %69, %70 in 1 : vector<8x17xf32>, vector<8x239xf32> -> vector<8x256xf32>
    %c0_22 = arith.constant 0 : index
    %c0_23 = arith.constant 0 : index
    %72 = vector.load %arg2[%c0_22, %c0_23] : memref<9x256xf32, #tpu.memory_space<vmem>>, vector<1x256xf32>
    %73 = vector.broadcast %72 : vector<1x256xf32> to vector<8x256xf32>
    %74 = arith.mulf %71, %73 : vector<8x256xf32>
    %75 = vector.extract_strided_slice %68 {offsets = [0, 240], sizes = [8, 16], strides = [1, 1]} : vector<8x256xf32> to vector<8x16xf32>
    %76 = vector.extract_strided_slice %68 {offsets = [0, 0], sizes = [8, 240], strides = [1, 1]} : vector<8x256xf32> to vector<8x240xf32>
    %77 = tpu.concatenate %75, %76 in 1 : vector<8x16xf32>, vector<8x240xf32> -> vector<8x256xf32>
    %c1_24 = arith.constant 1 : index
    %c0_25 = arith.constant 0 : index
    %78 = vector.load %arg2[%c1_24, %c0_25] : memref<9x256xf32, #tpu.memory_space<vmem>>, vector<1x256xf32>
    %79 = vector.broadcast %78 : vector<1x256xf32> to vector<8x256xf32>
    %80 = arith.mulf %77, %79 : vector<8x256xf32>
    %81 = vector.extract_strided_slice %68 {offsets = [0, 241], sizes = [8, 15], strides = [1, 1]} : vector<8x256xf32> to vector<8x15xf32>
    %82 = vector.extract_strided_slice %68 {offsets = [0, 0], sizes = [8, 241], strides = [1, 1]} : vector<8x256xf32> to vector<8x241xf32>
    %83 = tpu.concatenate %81, %82 in 1 : vector<8x15xf32>, vector<8x241xf32> -> vector<8x256xf32>
    %c2_26 = arith.constant 2 : index
    %c0_27 = arith.constant 0 : index
    %84 = vector.load %arg2[%c2_26, %c0_27] : memref<9x256xf32, #tpu.memory_space<vmem>>, vector<1x256xf32>
    %85 = vector.broadcast %84 : vector<1x256xf32> to vector<8x256xf32>
    %86 = arith.mulf %83, %85 : vector<8x256xf32>
    %87 = vector.extract_strided_slice %68 {offsets = [0, 255], sizes = [8, 1], strides = [1, 1]} : vector<8x256xf32> to vector<8x1xf32>
    %88 = vector.extract_strided_slice %68 {offsets = [0, 0], sizes = [8, 255], strides = [1, 1]} : vector<8x256xf32> to vector<8x255xf32>
    %89 = tpu.concatenate %87, %88 in 1 : vector<8x1xf32>, vector<8x255xf32> -> vector<8x256xf32>
    %c3_28 = arith.constant 3 : index
    %c0_29 = arith.constant 0 : index
    %90 = vector.load %arg2[%c3_28, %c0_29] : memref<9x256xf32, #tpu.memory_space<vmem>>, vector<1x256xf32>
    %91 = vector.broadcast %90 : vector<1x256xf32> to vector<8x256xf32>
    %92 = arith.mulf %89, %91 : vector<8x256xf32>
    %c4_30 = arith.constant 4 : index
    %c0_31 = arith.constant 0 : index
    %93 = vector.load %arg2[%c4_30, %c0_31] : memref<9x256xf32, #tpu.memory_space<vmem>>, vector<1x256xf32>
    %94 = vector.broadcast %93 : vector<1x256xf32> to vector<8x256xf32>
    %95 = arith.mulf %68, %94 : vector<8x256xf32>
    %96 = vector.extract_strided_slice %68 {offsets = [0, 1], sizes = [8, 255], strides = [1, 1]} : vector<8x256xf32> to vector<8x255xf32>
    %97 = vector.extract_strided_slice %68 {offsets = [0, 0], sizes = [8, 1], strides = [1, 1]} : vector<8x256xf32> to vector<8x1xf32>
    %98 = tpu.concatenate %96, %97 in 1 : vector<8x255xf32>, vector<8x1xf32> -> vector<8x256xf32>
    %c5_32 = arith.constant 5 : index
    %c0_33 = arith.constant 0 : index
    %99 = vector.load %arg2[%c5_32, %c0_33] : memref<9x256xf32, #tpu.memory_space<vmem>>, vector<1x256xf32>
    %100 = vector.broadcast %99 : vector<1x256xf32> to vector<8x256xf32>
    %101 = arith.mulf %98, %100 : vector<8x256xf32>
    %102 = vector.extract_strided_slice %68 {offsets = [0, 15], sizes = [8, 241], strides = [1, 1]} : vector<8x256xf32> to vector<8x241xf32>
    %103 = vector.extract_strided_slice %68 {offsets = [0, 0], sizes = [8, 15], strides = [1, 1]} : vector<8x256xf32> to vector<8x15xf32>
    %104 = tpu.concatenate %102, %103 in 1 : vector<8x241xf32>, vector<8x15xf32> -> vector<8x256xf32>
    %c6_34 = arith.constant 6 : index
    %c0_35 = arith.constant 0 : index
    %105 = vector.load %arg2[%c6_34, %c0_35] : memref<9x256xf32, #tpu.memory_space<vmem>>, vector<1x256xf32>
    %106 = vector.broadcast %105 : vector<1x256xf32> to vector<8x256xf32>
    %107 = arith.mulf %104, %106 : vector<8x256xf32>
    %108 = vector.extract_strided_slice %68 {offsets = [0, 16], sizes = [8, 240], strides = [1, 1]} : vector<8x256xf32> to vector<8x240xf32>
    %109 = vector.extract_strided_slice %68 {offsets = [0, 0], sizes = [8, 16], strides = [1, 1]} : vector<8x256xf32> to vector<8x16xf32>
    %110 = tpu.concatenate %108, %109 in 1 : vector<8x240xf32>, vector<8x16xf32> -> vector<8x256xf32>
    %c7_36 = arith.constant 7 : index
    %c0_37 = arith.constant 0 : index
    %111 = vector.load %arg2[%c7_36, %c0_37] : memref<9x256xf32, #tpu.memory_space<vmem>>, vector<1x256xf32>
    %112 = vector.broadcast %111 : vector<1x256xf32> to vector<8x256xf32>
    %113 = arith.mulf %110, %112 : vector<8x256xf32>
    %114 = vector.extract_strided_slice %68 {offsets = [0, 17], sizes = [8, 239], strides = [1, 1]} : vector<8x256xf32> to vector<8x239xf32>
    %115 = vector.extract_strided_slice %68 {offsets = [0, 0], sizes = [8, 17], strides = [1, 1]} : vector<8x256xf32> to vector<8x17xf32>
    %116 = tpu.concatenate %114, %115 in 1 : vector<8x239xf32>, vector<8x17xf32> -> vector<8x256xf32>
    %c8_38 = arith.constant 8 : index
    %c0_39 = arith.constant 0 : index
    %117 = vector.load %arg2[%c8_38, %c0_39] : memref<9x256xf32, #tpu.memory_space<vmem>>, vector<1x256xf32>
    %118 = vector.broadcast %117 : vector<1x256xf32> to vector<8x256xf32>
    %119 = arith.mulf %116, %118 : vector<8x256xf32>
    %120 = tpu.concatenate %74, %80, %86, %92, %95, %101, %107, %113, %119 in 0 : vector<8x256xf32>, vector<8x256xf32>, vector<8x256xf32>, vector<8x256xf32>, vector<8x256xf32>, vector<8x256xf32>, vector<8x256xf32>, vector<8x256xf32>, vector<8x256xf32> -> vector<72x256xf32>
    %121 = tpu.concatenate %120, %1 in 0 : vector<72x256xf32>, vector<4x256xf32> -> vector<76x256xf32>
    %c0_40 = arith.constant 0 : index
    %c0_41 = arith.constant 0 : index
    %122 = vector.load %arg5[%c0_40, %c0_41] : memref<8x76xf32, #tpu.memory_space<vmem>>, vector<8x76xf32>
    %cst_42 = arith.constant dense<0.000000e+00> : vector<8x256xf32>
    %123 = tpu.matmul %122, %121, %cst_42 {dimension_numbers = #tpu.dot_dimension_numbers<[1], [0], [0], [1], [0, 0, 1, 1], [], []>} : vector<8x76xf32>, vector<76x256xf32>, vector<8x256xf32> -> vector<8x256xf32>
    %c0_43 = arith.constant 0 : index
    %c0_44 = arith.constant 0 : index
    %124 = vector.load %arg6[%c0_43, %c0_44] : memref<8x1xf32, #tpu.memory_space<vmem>>, vector<8x1xf32>
    %125 = vector.broadcast %124 : vector<8x1xf32> to vector<8x256xf32>
    %126 = arith.addf %123, %125 : vector<8x256xf32>
    %c0_45 = arith.constant 0 : index
    %c0_46 = arith.constant 0 : index
    %c0_47 = arith.constant 0 : index
    %127 = vector.load %arg9[%c0_45, %c0_46, %c0_47] : memref<1x8x256xf32, #tpu.memory_space<vmem>>, vector<1x8x256xf32>
    %128 = vector.shape_cast %127 : vector<1x8x256xf32> to vector<8x256xf32>
    %129 = vector.shape_cast %126 : vector<8x256xf32> to vector<1x8x256xf32>
    tpu.vector_store %arg9[%c0_45, %c0_46, %c0_47], %129 {strides = array<i32>} : memref<1x8x256xf32, #tpu.memory_space<vmem>>, vector<1x8x256xf32>,
    return
  }
  func.func @transform_0(%arg0: i32) -> (i32, i32, i32) {
    %c0_i32 = arith.constant 0 : i32
    %c0_i32_0 = arith.constant 0 : i32
    %c0_i32_1 = arith.constant 0 : i32
    return %arg0, %c0_i32, %c0_i32_0 : i32, i32, i32
  }
  func.func @transform_1(%arg0: i32) -> (i32, i32) {
    %c0_i32 = arith.constant 0 : i32
    %c0_i32_0 = arith.constant 0 : i32
    %c0_i32_1 = arith.constant 0 : i32
    return %c0_i32, %c0_i32_0 : i32, i32
  }
  func.func @transform_2(%arg0: i32) -> (i32, i32) {
    %c0_i32 = arith.constant 0 : i32
    %c0_i32_0 = arith.constant 0 : i32
    %c0_i32_1 = arith.constant 0 : i32
    return %c0_i32, %c0_i32_0 : i32, i32
  }
  func.func @transform_3(%arg0: i32) -> (i32, i32) {
    %c0_i32 = arith.constant 0 : i32
    %c0_i32_0 = arith.constant 0 : i32
    %c0_i32_1 = arith.constant 0 : i32
    return %c0_i32, %c0_i32_0 : i32, i32
  }
  func.func @transform_4(%arg0: i32) -> (i32, i32) {
    %c0_i32 = arith.constant 0 : i32
    %c0_i32_0 = arith.constant 0 : i32
    %c0_i32_1 = arith.constant 0 : i32
    return %c0_i32, %c0_i32_0 : i32, i32
  }
  func.func @transform_5(%arg0: i32) -> (i32, i32) {
    %c0_i32 = arith.constant 0 : i32
    %c0_i32_0 = arith.constant 0 : i32
    %c0_i32_1 = arith.constant 0 : i32
    return %c0_i32, %c0_i32_0 : i32, i32
  }
  func.func @transform_6(%arg0: i32) -> (i32, i32) {
    %c0_i32 = arith.constant 0 : i32
    %c0_i32_0 = arith.constant 0 : i32
    %c0_i32_1 = arith.constant 0 : i32
    return %c0_i32, %c0_i32_0 : i32, i32
  }
  func.func @transform_7(%arg0: i32) -> (i32, i32) {
    %c0_i32 = arith.constant 0 : i32
    %c0_i32_0 = arith.constant 0 : i32
    %c0_i32_1 = arith.constant 0 : i32
    return %c0_i32, %c0_i32_0 : i32, i32
  }
  func.func @transform_8(%arg0: i32) -> (i32, i32, i32) {
    %c0_i32 = arith.constant 0 : i32
    %c0_i32_0 = arith.constant 0 : i32
    %c0_i32_1 = arith.constant 0 : i32
    return %arg0, %c0_i32, %c0_i32_0 : i32, i32, i32
  }
}

</mosaic_0001>

<bundles_post_ra>
// kernel: tpu_custom_call.1
= control target key start
LH: loop header
LB: loop body
LE: loop exit
PB: predicated region body
PF: predicated region fallthrough
CT: control target
= control target key end

     0   :  { %13 = vsyncpa [#allocation3], 0  ;;  %s1592_s0 = inlined_call_operand.vmem [shape: f32[2,4,256], index: 0, kind: input, shape index: {}]   ;;  %s1593_s1 = inlined_call_operand.hbm [shape: f32[9,256], index: 1, kind: input, shape index: {}]   ;;  %s1594_s2 = inlined_call_operand.vmem [shape: f32[8,36], index: 2, kind: input, shape index: {}]   ;;  %s1595_s3 = inlined_call_operand.vmem [shape: f32[8,1], index: 3, kind: input, shape index: {}]   ;;  %s1596_s4 = inlined_call_operand.vmem [shape: f32[8,76], index: 4, kind: input, shape index: {}]   ;;  %s1597_s5 = inlined_call_operand.vmem [shape: f32[8,1], index: 5, kind: input, shape index: {}]   ;;  %s1598_s6 = inlined_call_operand.vmem [shape: f32[4,1], index: 6, kind: input, shape index: {}]   ;;  %s1599_s7 = inlined_call_operand.vmem [shape: f32[4,1], index: 7, kind: input, shape index: {}]   ;;  %s1600_s8 = inlined_call_operand.hbm [shape: f32[2,8,256], index: 8, kind: output, shape index: {}]  }
   0x1   :  { %14 = vsyncpa [#allocation4], 0 }
   0x2   :  { %16 = vsyncpa [#allocation4 + $0x1], 0  ;;  %s1236_s27 = smov 0   ;;  %s1238_s28 = smov 0  }
   0x3   :  { %s1240_s29 = smov 0   ;;  %s1242_s30 = smov 0  }
   0x4 LB: > { %s1257_s9 = sadd.s32 4294967295, %s1173_s30   ;;  %s960_s10 = sadd.s32 4294967294, %s1173_s30   ;;  %s1173_s30 = sphi %s1242_s30, %s1616_s30   ;;  %s1169_s29 = sphi %s1240_s29, %s1615_s29   ;;  %s1165_s28 = sphi %s1238_s28, %s1614_s28   ;;  %s1161_s27 = sphi %s1236_s27, %s1613_s27  }
   0x5   : > { %s1261_s11 = sadd.s32 1, %s1173_s30   ;;  %s202_s12 = sadd.s32 1, %s1169_s29 }
   0x6   : > { %s199_s13 = ssub.s32 %s1173_s30, %s1261_s11  ;;  %p212_p0 = scmp.ne.s32.totalorder %s1169_s29, %s1165_s28 }
   0x7   : > { %p200_p1 = scmp.eq.s32.totalorder %s199_s13, 0  ;;  %p213_p2 = scmp.eq.s32.totalorder %s1257_s9, 1 }
   0x8   : > { %p218_p3 = scmp.ne.s32.totalorder %s1165_s28, %s1161_s27  ;;  %p219_p4 = scmp.eq.s32.totalorder %s960_s10, 1 }
   0x9   : > { %s1272_s14 = scalar_select %p200_p1, %s1169_s29, %s202_s12  }
   0xa   : > { %p1274_p5 = por %p213_p2, %p212_p0  ;;  %p1278_p6 = por %p219_p4, %p218_p3 }
   0xb   : > { %p961_p7 = scmp.ge.s32.totalorder %s1173_s30, 1  ;;  %p226_p8 = scmp.lt.s32.totalorder %s1173_s30, 3 }
   0xc   : > { %s1604_s15 = scalar_select %p1274_p5, 1, 0 }
   0xd   : > { %s1605_s16 = scalar_select %p1278_p6, 1, 0 }
   0xe   : > { %p1601_p9 = scmp.eq.s32.totalorder %s1257_s9, 0  ;;  %p1285_p10 = pnand %p961_p7, %p226_p8 }
   0xf   : > { %s1175_s18 = smov [#allocation2]   ;;  %s1079_s23 = scalar_lea.hbm %s1593_s1, 512 }
  0x10   : > { %s1606_s17 = scalar_select %p1285_p10, 1, 0 }
  0x11   : > { %s238_s19 = sshll.u32 %s1175_s18, 4  ;;  %p1018_p11 = pneg %p1285_p10  ;;  %s239_s19 = int_to_ptr.vmem [resolvable:$true] %s238_s19 }
  0x12   : > { %p1080_p13 = scmp.ne.s32.totalorder %s1593_s1, %s1079_s23  ;;  %p1086_p3 = scmp.lt.u32.totalorder %s1079_s23, %s1593_s1 }
  0x13   : > { %p1293_p12 = pnand %p1601_p9, %p1018_p11 }
  0x15   : > { %p1081_p0 = pneg %p1293_p12 }
  0x17   : > { %p1082_p1 = pnand %p1081_p0, %p1080_p13 }
  0x19   : > { %p1083_p2 = pneg %p1082_p1 }
  0x1b   : > { %p1088_p4 = pnand %p1086_p3, %p1083_p2 }
  0x1d   : > { %1091 = shalt.err (!%p1088_p4)
}
  0x1e   : > { %s1092_s12 = scalar_lea.vmem %s239_s19, 512  ;;  %p1100_p9 = scmp.lt.s32.totalorder %s239_s19, %s239_s19 }
  0x1f   : > { %p1093_p7 = scmp.ne.s32.totalorder %s239_s19, %s1092_s12  ;;  %p1101_p6 = scmp.lt.s32.totalorder %s1092_s12, %s1092_s12 }
  0x21   : > { %p1095_p8 = pnand %p1093_p7, %p1081_p0  ;;  %p1102_p5 = por %p1101_p6, %p1100_p9 }
  0x23   : > { %p1096_p11 = pneg %p1095_p8 }
  0x25   : > { %p1103_p10 = pnand %p1102_p5, %p1096_p11 }
  0x27   : > { %1106 = shalt.err (!%p1103_p10)
}
  0x28   : > { %s1176_s13 = smov 256   ;;  %s1177_s18 = smov 16  }
  0x29   : > { %1021 = dma.hbm_to_vmem [thread:$0]  (!%p1293_p12), %s1593_s1, 512, %s239_s19, [#allocation3], %s1176_s13, %s1176_s13, %s1177_s18  }
  0x2a   : > { %p1608_p13 = scmp.ne.s32.totalorder %s1606_s17, 0 }
  0x2b   : > { %p1609_p1 = scmp.eq.s32.totalorder (!%p1608_p13), %s1257_s9, 0 }
  0x2c   : > { %280 = sbr.rel (%p1608_p13) target bundleno = 944 (0x3b0), region = 52 }
  0x33   : > { %1152 = dma.done.wait (%p1609_p1), [#allocation3], 512   ;;  %p1610_p0 = pmov %p1609_p1 }
  0x34   : > { %v1178_v0 = vmov 0   ;;  %v320_v1 = vld [vmem:[%s1598_s6] sm:$0xf]  ;;  %p314_p5 = scmp.lt.s32.totalorder %s1257_s9, 1  ;;  %v1179_v3 = vmov 839922192   ;;  %v328_v5 = vlaneseq }
  0x35   : > { %1154 = vsyncadd (%p1610_p0), [#allocation3], 4294966784  ;;  %1076 = vset.pattern.permute.xlu0 %v1178_v0  ;;  %1077 = vset.pattern.permute.xlu1 %v1178_v0  ;;  %v334_v2 = vld [vmem:[%s1599_s7] sm:$0xf]  ;;  %v326_v4 = vunpack.c.l.s4 %v1179_v3  ;;  %s1180_s13 = smov 127   ;;  %s1181_s18 = smov 16  }
  0x36   : > { %323 = vperm.xlu0 %1076, %v320_v1   ;;  %s315_s17 = scalar_select %p314_p5, %s1257_s9, 1  ;;  %v329_v7 = vshrl.u32 %v328_v5, 7  ;;  %v601_v18 = vld [vmem:[%s1595_s3] sm:$0xff]  ;;  %v1188_v19 = vmov 0.0   ;;  %vm431_vm0 = vcmask 7168   ;;  %vm357_vm1 = vcmask 138240  }
  0x37   : > { %v327_v6 = vunpack.c.0.s8 %v326_v4  ;;  %s1182_s21 = smov 112   ;;  %s1183_s22 = smov 1   ;;  %681 = vmatprep.mubr.f32.mxu0 %v1188_v19  ;;  %865 = vmatprep.mubr.f32.mxu1 %v1188_v19  ;;  %v452_v26 = vld [vmem:[#allocation2 + $0x4] ss:$8 sm:$0x3]  ;;  %vm406_vm2 = vcmask 121856  }
  0x38   : > { %s980_s25 = sshll.u32 %s315_s17, 3  ;;  %s1184_s23 = smov 17   ;;  %v1364_v22 = vsub.s32 0, %v329_v7  ;;  %v1366_v23 = vsub.s32 1, %v329_v7  ;;  %vm381_vm3 = vcmask 130048   ;;  %vm592_vm4 = vcmask 1043456  }
  0x39   : > { %v330_v8 = vsub.s32 %v327_v6, %v329_v7  ;;  %s318_s12 = scalar_lea.vmem %s1592_s0, %s980_s25  ;;  %s1185_s20 = smov 15   ;;  %v437_v28 = vld [vmem:[#allocation2 + $0x3] ss:$8 sm:$0x3]  ;;  %vm469_vm5 = vcmask 1039360   ;;  %vm519_vm6 = vcmask 916480  }
  0x3a   : > { %337 = vperm.xlu0 %1076, %v334_v2   ;;  %v1330_v11 = vld [vmem:[%s318_s12] sm:$0xff]  ;;  %s1186_s19 = smov 113   ;;  %s1187_s24 = smov 111   ;;  %v1371_v30 = vrot.slane %v452_v26, %v1364_v22  ;;  %v1374_v31 = vrot.slane %v452_v26, %v1366_v23  ;;  %v1377_v34 = vrot.slane %v437_v28, %v1364_v22  ;;  %v1380_v35 = vrot.slane %v437_v28, %v1366_v23 }
  0x3b   : > { %v362_v32 = vld [vmem:[#allocation2] ss:$8 sm:$0x3]  ;;  %v412_v33 = vld [vmem:[#allocation2 + $0x2] ss:$8 sm:$0x3] }
  0x3c   : > { %v387_v36 = vld [vmem:[#allocation2 + $0x1] ss:$8 sm:$0x3]  ;;  %v462_v41 = vcombine.low %v1371_v30, %v1374_v31  ;;  %v1387_v42 = vrot.slane %v362_v32, %v1364_v22  ;;  %v1390_v43 = vrot.slane %v412_v33, %v1364_v22  ;;  %v476_v44 = vld [vmem:[#allocation2 + $0x5] ss:$8 sm:$0x3]  ;;  %v1393_v45 = vrot.slane %v412_v33, %v1366_v23 }
  0x3d   : > { %v1396_v46 = vrot.slane %v387_v36, %v1364_v22  ;;  %v1399_v47 = vrot.slane %v387_v36, %v1366_v23  ;;  %v1404_v50 = vrot.slane %v362_v32, %v1366_v23  ;;  %v1409_v55 = vrot.slane %v476_v44, %v1364_v22  ;;  %v526_v0 = vld [vmem:[#allocation2 + $0x7] ss:$8 sm:$0x3]  ;;  %p1611_p9 = scmp.ne.s32.totalorder %s1604_s15, 0  ;;  %s1190_s12 = smov [#allocation5]  }
  0x3e   : > { %v1420_v3 = vrot.slane %v476_v44, %v1366_v23  ;;  %vm494_vm7 = vcmask 924672   ;;  %vm544_vm8 = vcmask 908288   ;;  %vm607_vm9 = vcmask 293888  }
  0x3f   : > { %vm1189_vm10 = vmmov 1   ;;  %vm793_vm12 = vcmask 621568  }
  0x40   : > { %vm1007_vm11 = vmpackc.low %vm592_vm4, %vm1189_vm10 }
  0xb5   : > { %v324_v9 = vpop.permute.xlu0 %323 }
  0xb6   : > { %v331_v10 = vrot.slane %v324_v9, %v330_v8 }
  0xb8   : > { %v333_v13 = vmul.f32 %v331_v10, %v1330_v11 }
  0xb9   : > { %v338_v12 = vpop.permute.xlu0 %337 }
  0xba   : > { %v345_v14 = vrot.slane %v338_v12, %v330_v8  ;;  %v1427_v12 = vrot.slane %v526_v0, %v1364_v22 }
  0xbc   : > { %v347_v15 = vadd.f32 %v345_v14, %v333_v13  ;;  %v1430_v13 = vrot.slane %v526_v0, %v1366_v23 }
  0xbe   : > { %v1333_v16 = vmax.f32 %v347_v15, 0.0 }
  0xc0   : > { %465 = vrot.lane.b32.xlu0 %v1333_v16, %s1180_s13  ;;  %379 = vrot.lane.b32.xlu1 %v1333_v16, %s1181_s18  ;;  %v351_v17 = vcombine.high %v1333_v16, %v1333_v16  ;;  %v464_v28 = vmul.f32 %v462_v41, %v1333_v16 }
  0xc4   : > { %515 = vrot.lane.b32.xlu0 %v1333_v16, %s1182_s21  ;;  %429 = vrot.lane.b32.xlu1 %v1333_v16, %s1183_s22 }
  0xc8   : > { %355 = vrot.lane.b32.xlu1 %v1333_v16, %s1184_s23  ;;  %426 = vrot.lane.b32.xlu0 %v351_v17, %s1183_s22 }
  0xcc   : > { %404 = vrot.lane.b32.xlu1 %v1333_v16, %s1185_s20  ;;  %352 = vrot.lane.b32.xlu0 %v351_v17, %s1184_s23 }
  0xd0   : > { %401 = vrot.lane.b32.xlu0 %v351_v17, %s1185_s20  ;;  %376 = vrot.lane.b32.xlu1 %v351_v17, %s1181_s18 }
  0xd4   : > { %490 = vrot.lane.b32.xlu0 %v1333_v16, %s1186_s19  ;;  %467 = vrot.lane.b32.xlu1 %v351_v17, %s1180_s13 }
  0xd8   : > { %540 = vrot.lane.b32.xlu0 %v1333_v16, %s1187_s24  ;;  %517 = vrot.lane.b32.xlu1 %v351_v17, %s1182_s21  ;;  %v551_v16 = vld [vmem:[#allocation2 + $0x10] ss:$8 sm:$0x3] }
  0xdc   : > { %604 = vperm.xlu0 %1076, %v601_v18   ;;  %492 = vrot.lane.b32.xlu1 %v351_v17, %s1186_s19 }
  0xe0   : > { %542 = vrot.lane.b32.xlu1 %v351_v17, %s1187_s24 }
 0x132   : > { %v466_v20 = vpop.permute.xlu0 %465  ;;  %v380_v21 = vpop.permute.xlu1 %379 }
 0x136   : > { %v1368_v24 = vpop.permute.xlu0 %515  ;;  %v430_v25 = vpop.permute.xlu1 %429 }
 0x13a   : > { %v356_v27 = vpop.permute.xlu1 %355  ;;  %v427_v29 = vpop.permute.xlu0 %426 }
 0x13b   : > { %v432_v37 = vsel %vm431_vm0, %v430_v25, %v427_v29  ;;  %v435_v38 = vsel %vm431_vm0, %v427_v29, %v430_v25  ;;  %v501_v25 = vld [vmem:[#allocation2 + $0x6] ss:$8 sm:$0x3] }
 0x13c   : > { %v449_v48 = vmul.f32 %v1377_v34, %v435_v38  ;;  %v450_v49 = vmul.f32 %v1380_v35, %v432_v37  ;;  %v1446_v38 = vrot.slane %v501_v25, %v1364_v22 }
 0x13e   : > { %v405_v39 = vpop.permute.xlu1 %404  ;;  %v353_v40 = vpop.permute.xlu0 %352  ;;  %v573_v1 = vrot.slane %v449_v48, 4  ;;  %v574_v2 = vrot.slane %v450_v49, 4  ;;  %v578_v48 = vcombine.high %v464_v28, %v464_v28 }
 0x13f   : > { %v358_v51 = vsel %vm357_vm1, %v356_v27, %v353_v40  ;;  %v361_v52 = vsel %vm357_vm1, %v353_v40, %v356_v27 }
 0x140   : > { %v374_v4 = vmul.f32 %v1387_v42, %v361_v52  ;;  %v375_v5 = vmul.f32 %v1404_v50, %v358_v51  ;;  %v1454_v51 = vrot.slane %v551_v16, %v1366_v23 }
 0x142   : > { %v402_v53 = vpop.permute.xlu0 %401  ;;  %v377_v54 = vpop.permute.xlu1 %376 }
 0x143   : > { %v407_v56 = vsel %vm406_vm2, %v405_v39, %v402_v53  ;;  %v410_v57 = vsel %vm406_vm2, %v402_v53, %v405_v39  ;;  %v382_v58 = vsel %vm381_vm3, %v380_v21, %v377_v54  ;;  %v385_v59 = vsel %vm381_vm3, %v377_v54, %v380_v21 }
 0x144   : > { %v424_v60 = vmul.f32 %v1390_v43, %v410_v57  ;;  %v425_v61 = vmul.f32 %v1393_v45, %v407_v56  ;;  %v399_v62 = vmul.f32 %v1396_v46, %v385_v59  ;;  %v400_v63 = vmul.f32 %v1399_v47, %v382_v58 }
 0x145   : > { %v1449_v39 = vrot.slane %v501_v25, %v1366_v23 }
 0x146   : > { %v567_v6 = vrot.slane %v399_v62, 4  ;;  %v568_v7 = vrot.slane %v400_v63, 4  ;;  %v468_v8 = vpop.permute.xlu1 %467  ;;  %v596_v15 = vsel %vm592_vm4, %v425_v61, %v574_v2  ;;  %v595_v18 = vsel %vm592_vm4, %v424_v60, %v573_v1  ;;  %v491_v33 = vpop.permute.xlu0 %490 }
 0x147   : > { %v470_v9 = vsel %vm469_vm5, %v466_v20, %v468_v8  ;;  %v474_v10 = vsel %vm469_vm5, %v468_v8, %v466_v20  ;;  %v1464_v1 = vrot.slane %v551_v16, %v1364_v22 }
 0x148   : > { %v594_v14 = vsel %vm592_vm4, %v375_v5, %v568_v7  ;;  %v593_v17 = vsel %vm592_vm4, %v374_v4, %v567_v6  ;;  %v488_v26 = vmul.f32 %v1409_v55, %v470_v9  ;;  %v489_v20 = vmul.f32 %v1420_v3, %v474_v10  ;;  %v349_v6 = vld [vmem:[%s1594_s2] sm:$0xff] }
 0x149   : > { %v982_v19 = vpack.c.bf16 %v596_v15, %v594_v14  ;;  %v984_v21 = vpack.c.bf16 %v595_v18, %v593_v17  ;;  %v787_v17 = vld [vmem:[%s1597_s5] sm:$0xff] }
 0x14a   : > { %v518_v27 = vpop.permute.xlu1 %517  ;;  %v582_v40 = vrot.slane %v488_v26, 4  ;;  %v583_v41 = vrot.slane %v489_v20, 4  ;;  %v541_v57 = vpop.permute.xlu0 %540 }
 0x14b   : > { %v520_v29 = vsel %vm519_vm6, %v1368_v24, %v518_v27  ;;  %v524_v32 = vsel %vm519_vm6, %v518_v27, %v1368_v24  ;;  %983 = vmatprep.subr.bf16.mxu0 %v982_v19 }
 0x14c   : > { %v538_v36 = vmul.f32 %v1427_v12, %v520_v29  ;;  %v539_v37 = vmul.f32 %v1430_v13, %v524_v32  ;;  %985 = vmatpush1.bf16.msra.mxu0 %v984_v21  ;;  %v598_v59 = vsel %vm592_vm4, %v578_v48, %v583_v41  ;;  %v597_v61 = vsel %vm592_vm4, %v464_v28, %v582_v40 }
 0x14e   : > { %v493_v44 = vpop.permute.xlu1 %492  ;;  %v588_v52 = vrot.slane %v538_v36, 4  ;;  %v589_v53 = vrot.slane %v539_v37, 4 }
 0x14f   : > { %v495_v24 = vsel %vm494_vm7, %v491_v33, %v493_v44  ;;  %v499_v49 = vsel %vm494_vm7, %v493_v44, %v491_v33 }
 0x150   : > { %v513_v54 = vmul.f32 %v1446_v38, %v495_v24  ;;  %v514_v56 = vmul.f32 %v1449_v39, %v499_v49 }
 0x152   : > { %v543_v58 = vpop.permute.xlu1 %542  ;;  %v600_v60 = vsel %vm592_vm4, %v514_v56, %v589_v53  ;;  %v599_v62 = vsel %vm592_vm4, %v513_v54, %v588_v52 }
 0x153   : > { %v549_v63 = vsel %vm544_vm8, %v543_v58, %v541_v57  ;;  %v986_v23 = vpack.c.bf16 %v600_v60, %v598_v59  ;;  %v988_v0 = vpack.c.bf16 %v599_v62, %v597_v61  ;;  %v545_v4 = vsel %vm544_vm8, %v541_v57, %v543_v58 }
 0x154   : > { %v564_v2 = vmul.f32 %v1454_v51, %v549_v63  ;;  %v563_v5 = vmul.f32 %v1464_v1, %v545_v4 }
 0x155   : > { %987 = vmatprep.subr.bf16.mxu0 %v986_v23 }
 0x156   : > { %989 = vmatpush1.bf16.msra.mxu0 %v988_v0 }
 0x157   : > { %969 = vmatprep.subr.msk.mxu0 %vm592_vm4, %v564_v2 }
 0x15a   : > { %970 = vmatpush1.msk.msra.mxu0 %vm592_vm4, %v563_v5 }
 0x15b   : > { %971 = vmatmul.mubr.msk.f32.vlgmr.msra.gmra.mrb[0].mxu0 %vm607_vm9, %v349_v6  ;;  %v605_v22 = vpop.permute.xlu0 %604 }
 0x22e   : > { %v683_v7 = vpop.f32.mrb[0].mxu0 }
 0x22f   : > { %v684_v8 = vadd.f32 %v683_v7, %v605_v22  ;;  %v685_v9 = vpop.f32.mrb[1].mxu0 }
 0x230   : > { %v686_v14 = vadd.f32 %v685_v9, %v605_v22 }
 0x231   : > { %v1474_v10 = vmax.f32 %v684_v8, 0.0 }
 0x232   : > { %v689_v15 = vmax.f32 %v686_v14, 0.0 }
 0x233   : > { %740 = vrot.lane.b32.xlu1 %v1474_v10, %s1180_s13  ;;  %695 = vrot.lane.b32.xlu0 %v1474_v10, %s1184_s23 }
 0x237   : > { %691 = vrot.lane.b32.xlu1 %v689_v15, %s1184_s23  ;;  %706 = vrot.lane.b32.xlu0 %v1474_v10, %s1181_s18 }
 0x23b   : > { %703 = vrot.lane.b32.xlu1 %v689_v15, %s1181_s18  ;;  %717 = vrot.lane.b32.xlu0 %v1474_v10, %s1185_s20  ;;  %s1111_s18 = sshll.u32 %s1190_s12, 4  ;;  %s1112_s18 = int_to_ptr.vmem [resolvable:$false] %s1111_s18 }
 0x23f   : > { %714 = vrot.lane.b32.xlu1 %v689_v15, %s1185_s20  ;;  %728 = vrot.lane.b32.xlu0 %v1474_v10, %s1183_s22  ;;  %s981_s20 = sshll.u32 %s1257_s9, 8 }
 0x240   : > { %s1550_s26 = scalar_lea.hbm %s1600_s8, %s981_s20 }
 0x243   : > { %725 = vrot.lane.b32.xlu1 %v689_v15, %s1183_s22  ;;  %742 = vrot.lane.b32.xlu0 %v689_v15, %s1180_s13  ;;  %s311_s22 = sand.u32 1, %s1165_s28   ;;  %s1113_s13 = scalar_lea.vmem %s1112_s18, 512 }
 0x244   : > { %s966_s23 = sshll.u32 %s311_s22, 4  ;;  %s875_s10 = scalar_lea.sflag [#allocation4], %s311_s22 }
 0x247   : > { %751 = vrot.lane.b32.xlu1 %v1474_v10, %s1186_s19  ;;  %753 = vrot.lane.b32.xlu0 %v689_v15, %s1186_s19  ;;  %s313_s19 = scalar_lea.vmem [#allocation5], %s966_s23 }
 0x24b   : > { %762 = vrot.lane.b32.xlu1 %v1474_v10, %s1182_s21  ;;  %764 = vrot.lane.b32.xlu0 %v689_v15, %s1182_s21 }
 0x24f   : > { %773 = vrot.lane.b32.xlu1 %v1474_v10, %s1187_s24  ;;  %775 = vrot.lane.b32.xlu0 %v689_v15, %s1187_s24  ;;  %s889_s24 = sshll.u32 %s313_s19, 4  ;;  %s1552_s24 = int_to_ptr.vmem [resolvable:$true] %s889_s24 }
 0x250   : > { %s1107_s9 = scalar_lea.vmem %s1552_s24, 256  ;;  %p1114_p2 = scmp.lt.s32.totalorder %s1552_s24, %s1112_s18 }
 0x251   : > { %p1108_p6 = scmp.ne.s32.totalorder %s1552_s24, %s1107_s9  ;;  %p1115_p3 = scmp.lt.s32.totalorder %s1113_s13, %s1107_s9 }
 0x253   : > { %790 = vperm.xlu1 %1077, %v787_v17   ;;  %p1109_p10 = pnand %p1108_p6, %p1611_p9  ;;  %p1116_p4 = por %p1115_p3, %p1114_p2 }
 0x255   : > { %p1110_p12 = pneg %p1109_p10 }
 0x257   : > { %p1117_p7 = pnand %p1116_p4, %p1110_p12 }
 0x2a5   : > { %v741_v18 = vpop.permute.xlu1 %740  ;;  %v696_v19 = vpop.permute.xlu0 %695 }
 0x2a9   : > { %v692_v21 = vpop.permute.xlu1 %691  ;;  %v707_v25 = vpop.permute.xlu0 %706 }
 0x2aa   : > { %v697_v26 = vsel %vm357_vm1, %v696_v19, %v692_v21  ;;  %v700_v20 = vsel %vm357_vm1, %v692_v21, %v696_v19 }
 0x2ab   : > { %v701_v33 = vmul.f32 %v700_v20, %v1387_v42  ;;  %v702_v37 = vmul.f32 %v697_v26, %v1404_v50 }
 0x2ad   : > { %v704_v27 = vpop.permute.xlu1 %703  ;;  %v718_v28 = vpop.permute.xlu0 %717 }
 0x2ae   : > { %v708_v29 = vsel %vm381_vm3, %v707_v25, %v704_v27  ;;  %v711_v32 = vsel %vm381_vm3, %v704_v27, %v707_v25 }
 0x2af   : > { %v712_v36 = vmul.f32 %v711_v32, %v1396_v46  ;;  %v713_v16 = vmul.f32 %v708_v29, %v1399_v47 }
 0x2b1   : > { %v715_v40 = vpop.permute.xlu1 %714  ;;  %v729_v41 = vpop.permute.xlu0 %728  ;;  %v990_v44 = vpack.c.bf16 %v713_v16, %v702_v37  ;;  %v992_v48 = vpack.c.bf16 %v712_v36, %v701_v33 }
 0x2b2   : > { %v722_v24 = vsel %vm406_vm2, %v715_v40, %v718_v28  ;;  %v719_v49 = vsel %vm406_vm2, %v718_v28, %v715_v40 }
 0x2b3   : > { %991 = vmatprep.subr.bf16.mxu1 %v990_v44  ;;  %v723_v52 = vmul.f32 %v722_v24, %v1390_v43  ;;  %v724_v46 = vmul.f32 %v719_v49, %v1393_v45  ;;  %v739_v45 = vmul.f32 %v689_v15, %v1374_v31 }
 0x2b4   : > { %993 = vmatpush1.bf16.msra.mxu1 %v992_v48 }
 0x2b5   : > { %v726_v53 = vpop.permute.xlu1 %725  ;;  %v743_v42 = vpop.permute.xlu0 %742 }
 0x2b6   : > { %v730_v50 = vsel %vm431_vm0, %v729_v41, %v726_v53  ;;  %v733_v47 = vsel %vm431_vm0, %v726_v53, %v729_v41  ;;  %v748_v54 = vsel %vm469_vm5, %v743_v42, %v741_v18  ;;  %v744_v58 = vsel %vm469_vm5, %v741_v18, %v743_v42  ;;  %v786_v18 = vld [vmem:[%s1596_s4] sm:$0xff] }
 0x2b7   : > { %v734_v56 = vmul.f32 %v733_v47, %v1377_v34  ;;  %v735_v57 = vmul.f32 %v730_v50, %v1380_v35  ;;  %v750_v59 = vmul.f32 %v748_v54, %v1420_v3  ;;  %v749_v63 = vmul.f32 %v744_v58, %v1409_v55 }
 0x2b8   : > { %v738_v35 = vmul.f32 %v1474_v10, %v1371_v30  ;;  %v785_v30 = vcombine.high %v1330_v11, %v1330_v11 }
 0x2b9   : > { %v752_v60 = vpop.permute.xlu1 %751  ;;  %v754_v43 = vpop.permute.xlu0 %753  ;;  %v994_v61 = vpack.c.bf16 %v735_v57, %v724_v46  ;;  %v996_v62 = vpack.c.bf16 %v734_v56, %v723_v52  ;;  %v998_v23 = vpack.c.bf16 %v750_v59, %v739_v45 }
 0x2ba   : > { %v755_v0 = vsel %vm494_vm7, %v752_v60, %v754_v43  ;;  %v759_v34 = vsel %vm494_vm7, %v754_v43, %v752_v60  ;;  %v1000_v31 = vpack.c.bf16 %v749_v63, %v738_v35 }
 0x2bb   : > { %995 = vmatprep.subr.bf16.mxu1 %v994_v61  ;;  %v760_v55 = vmul.f32 %v755_v0, %v1446_v38  ;;  %v761_v6 = vmul.f32 %v759_v34, %v1449_v39 }
 0x2bc   : > { %997 = vmatpush1.bf16.msra.mxu1 %v996_v62 }
 0x2bd   : > { %v763_v2 = vpop.permute.xlu1 %762  ;;  %999 = vmatprep.subr.bf16.mxu1 %v998_v23  ;;  %v765_v3 = vpop.permute.xlu0 %764 }
 0x2be   : > { %v766_v4 = vsel %vm519_vm6, %v763_v2, %v765_v3  ;;  %v770_v5 = vsel %vm519_vm6, %v765_v3, %v763_v2 }
 0x2bf   : > { %v771_v22 = vmul.f32 %v766_v4, %v1427_v12  ;;  %v772_v7 = vmul.f32 %v770_v5, %v1430_v13 }
 0x2c0   : > { %1001 = vmatpush1.bf16.msra.mxu1 %v1000_v31 }
 0x2c1   : > { %v774_v8 = vpop.permute.xlu1 %773  ;;  %v776_v9 = vpop.permute.xlu0 %775  ;;  %v1002_v10 = vpack.c.bf16 %v772_v7, %v761_v6  ;;  %v1004_v14 = vpack.c.bf16 %v771_v22, %v760_v55 }
 0x2c2   : > { %v777_v15 = vsel %vm544_vm8, %v774_v8, %v776_v9  ;;  %v781_v17 = vsel %vm544_vm8, %v776_v9, %v774_v8 }
 0x2c3   : > { %v782_v38 = vmul.f32 %v777_v15, %v1464_v1  ;;  %v783_v12 = vmul.f32 %v781_v17, %v1454_v51  ;;  %1003 = vmatprep.subr.bf16.mxu1 %v1002_v10 }
 0x2c4   : > { %1005 = vmatpush1.bf16.msra.mxu1 %v1004_v14 }
 0x2c5   : > { %v1006_v13 = vpack.c.bf16 %v785_v30, %v783_v12  ;;  %v1009_v39 = vpack.c.bf16 %v1330_v11, %v782_v38 }
 0x2c7   : > { %1008 = vmatprep.subr.msk.bf16.mxu1 %vm1007_vm11, %v1006_v13 }
 0x2c8   : > { %1011 = vmatpush1.bf16.msk.msra.mxu1 %vm1007_vm11, %v1009_v39 }
 0x2cb   : > { %974 = vmatmul.mubr.msk.f32.vlgmr.msra.gmra.mrb[0].mxu1 %vm793_vm12, %v786_v18 }
 0x2d2   : > { %v791_v51 = vpop.permute.xlu1 %790 }
 0x39e   : > { %v867_v1 = vpop.f32.mrb[0].mxu1 }
 0x39f   : > { %v868_v19 = vadd.f32 %v867_v1, %v791_v51  ;;  %v869_v21 = vpop.f32.mrb[1].mxu1 }
 0x3a0   : > { %v870_v25 = vadd.f32 %v869_v21, %v791_v51 }
 0x3a1   : > { %872 = vst [vmem:[%s313_s19] sm:$0xff] %v868_v19 }
 0x3a2   : > { %873 = vst [vmem:[%s313_s19 + $0x8] sm:$0xff] %v870_v25 }
 0x3a3   : > { %1120 = shalt.err (!%p1117_p7)
}
 0x3a4   : > { %s1121_s21 = scalar_lea.hbm %s1550_s26, 256  ;;  %s1125_s20 = scalar_lea.hbm %s1600_s8, 512 }
 0x3a5   : > { %p1122_p8 = scmp.ne.s32.totalorder %s1550_s26, %s1121_s21  ;;  %p1126_p1 = scmp.lt.u32.totalorder %s1550_s26, %s1600_s8 }
 0x3a6   : > { %p1127_p0 = scmp.lt.u32.totalorder %s1125_s20, %s1121_s21  ;;  %p1129_p6 = scmp.lt.u32.totalorder %s1121_s21, %s1550_s26 }
 0x3a7   : > { %p1123_p11 = pnand %p1122_p8, %p1611_p9 }
 0x3a8   : > { %p1128_p5 = por %p1127_p0, %p1126_p1 }
 0x3a9   : > { %p1124_p13 = pneg %p1123_p11 }
 0x3aa   : > { %p1130_p10 = por %p1129_p6, %p1128_p5 }
 0x3ac   : > { %p1131_p12 = pnand %p1130_p10, %p1124_p13 }
 0x3ae   : > { %1134 = shalt.err (!%p1131_p12)
}
 0x3af   : > { %1016 = dma.vmem_to_hbm [thread:$0]  (%p1611_p9), %s1552_s24, 256, %s1550_s26, %s875_s10  }
 0x3b0 PF: > { %p1028_p2 = scmp.ge.s32.totalorder %s1173_s30, 2  ;;  %s901_s25 = sand.u32 1, %s1161_s27  }
 0x3b1   : > { %p1612_p3 = scmp.ne.s32.totalorder %s1605_s16, 0  ;;  %s902_s9 = scalar_lea.sflag [#allocation4], %s901_s25 }
 0x3b3   : > { %p1023_p4 = pnand %p1028_p2, %p1612_p3 }
 0x3b5   : > { %1156 = dma.done.wait (!%p1023_p4), %s902_s9, 256  }
 0x3b6   : > { %1158 = vsyncadd (!%p1023_p4), %s902_s9, 4294967040  ;;  %p19_p7 = scmp.ge.s32.totalorder %s1261_s11, 4   ;;  %s1613_s27 = smov %s1165_s28 }
 0x3b7   : > { %s1614_s28 = smov %s1169_s29  ;;  %s1615_s29 = smov %s1272_s14 }
 0x3b8   : > { %s1616_s30 = smov %s1261_s11  ;;  %21 = sbr.rel (!%p19_p7) target bundleno = 4 (0x4), region = 100 }
 0x3bf   :  { %907 = vsyncpa [#allocation3], 1 }
 0x3c0   :  { %909 = vsyncpa [#allocation3 + $0x1], 1 }
 0x3c1   :  { %910 = vsyncpa [#allocation4], 1 }
 0x3c2   :  { %912 = vsyncpa [#allocation4 + $0x1], 1 }

</bundles_post_ra>
